<compile_context>
chip_gen: v6e
topology: v6e:2x2x1
jax: 0.10.0
libtpu: 0.0.40
codegen_flags: <defaults>
</compile_context>

<pallas_src>
import functools

import jax
import jax.numpy as jnp
from jax.experimental import pallas as pl
from jax.experimental.pallas import tpu as pltpu

_MIB = 1024 * 1024


def _round_up(n, m):
    return ((n + m - 1) // m) * m


def _cdiv(a, b):
    return (a + b - 1) // b


@functools.lru_cache(maxsize=1)
def _vmem_capacity_bytes():
    """Per-core VMEM capacity (128 MiB on v5e/v6e, 64 MiB per TC on v7x)."""
    try:
        cap = int(pltpu.get_tpu_info().vmem_capacity_bytes)
        if cap > 0:
            return cap
    except Exception:
        pass
    return 64 * _MIB  # conservative default (v7x per-TC size)


def _gelu_tanh(x):
    # GELU tanh approximation, matching torch.nn.GELU(approximate='tanh').
    # sqrt(2/pi)*(x + 0.044715*x^3) == c*x*(1 + 0.044715*x^2)
    c = 0.7978845608028654  # sqrt(2/pi)
    x2 = x * x
    inner = (c * x) * (1.0 + 0.044715 * x2)
    return (0.5 * x) * (1.0 + jnp.tanh(inner))


# ----------------------------------------------------------------------------
# Kernels
# ----------------------------------------------------------------------------
def _mlp_kernel_resident(x_ref, w1_ref, b1_ref, w2_ref, b2_ref, o_ref):
    # grid = (M tiles,). W1/W2/b1/b2 blocks are grid-invariant -> fetched from
    # HBM once and resident in VMEM across all M tiles; only x/out stream.
    h = jnp.dot(x_ref[...], w1_ref[...], preferred_element_type=jnp.float32)
    h = _gelu_tanh(h + b1_ref[...].astype(jnp.float32))
    y = jnp.dot(h.astype(w2_ref.dtype), w2_ref[...],
                preferred_element_type=jnp.float32)
    o_ref[...] = (y + b2_ref[...].astype(jnp.float32)).astype(o_ref.dtype)


def _mlp_kernel_htiled(x_ref, w1_ref, b1_ref, w2_ref, b2_ref, o_ref, acc_ref):
    # grid = (M tiles [parallel], H tiles [arbitrary / reduction]).
    j = pl.program_id(1)

    @pl.when(j == 0)
    def _init():
        # Fold the c_proj bias into the accumulator init (added exactly once).
        acc_ref[...] = jnp.broadcast_to(
            b2_ref[...].astype(jnp.float32), acc_ref.shape)

    h = jnp.dot(x_ref[...], w1_ref[...], preferred_element_type=jnp.float32)
    h = _gelu_tanh(h + b1_ref[...].astype(jnp.float32))
    acc_ref[...] += jnp.dot(h.astype(w2_ref.dtype), w2_ref[...],
                            preferred_element_type=jnp.float32)

    @pl.when(j == pl.num_programs(1) - 1)
    def _finalize():
        o_ref[...] = acc_ref[...].astype(o_ref.dtype)


# ----------------------------------------------------------------------------
# Wrapper
# ----------------------------------------------------------------------------
def prepare_mlp_params(w_fc, b_fc, w_proj, b_proj, dtype=None):
    """One-time conversion from PyTorch nn.Linear conventions (do at model
    init, NOT per forward call): w_fc (4C, C), b_fc (4C,), w_proj (C, 4C),
    b_proj (C,) -> w1 (C, H), b1 (1, H), w2 (H, C), b2 (1, C)."""
    w1 = w_fc.T
    w2 = w_proj.T
    b1 = b_fc.reshape(1, -1)
    b2 = b_proj.reshape(1, -1)
    if dtype is not None:
        w1, b1, w2, b2 = (a.astype(dtype) for a in (w1, b1, w2, b2))
    return w1, b1, w2, b2


@functools.partial(jax.jit, static_argnames=("tile_m",))
def mlp_pallas(x, w1, b1, w2, b2, *, tile_m=512):
    """x: (B, T, C); w1: (C, H); b1: (1, H); w2: (H, C); b2: (1, C)."""
    B, T, C = x.shape
    Cw, H = w1.shape
    assert Cw == C and w2.shape == (H, C) and b1.shape == (1, H) and b2.shape == (1, C)
    M = B * T

    x2 = x.reshape(M, C)
    x_dt = x.dtype
    w_dt = w1.dtype
    # bf16 fast path: if weights are narrower than activations, cast once so
    # both matmuls run the fast MXU path and x DMA bytes are halved.
    if jnp.dtype(w_dt).itemsize < jnp.dtype(x_dt).itemsize:
        x2 = x2.astype(w_dt)

    x_b = jnp.dtype(x2.dtype).itemsize
    w_b = jnp.dtype(w_dt).itemsize
    out_b = jnp.dtype(x_dt).itemsize

    vmem_cap = _vmem_capacity_bytes()
    vmem_budget = int(vmem_cap * 0.85)
    vmem_ceiling = int(vmem_cap * 0.9)

    # Clamp tile_m for small inputs; keep >= 2 M tiles when M is large enough
    # so both v7x TensorCores stay busy under "parallel" sharding.
    tile_m = max(8, min(tile_m, _round_up(M, 8)))
    if M > 256 and _cdiv(M, tile_m) < 2:
        tile_m = _round_up(_cdiv(M, 2), 8)

    def resident_vmem(tm):
        return (2 * tm * C * x_b            # x tiles (double-buffered)
                + 2 * tm * C * out_b        # out tiles
                + 2 * 2 * C * H * w_b       # W1 + W2 (budget 2 buffers each)
                + 2 * (H + C) * w_b         # biases
                + tm * H * (4 + w_b)        # f32 h + bf16/f32 cast copy
                + tm * C * 4)               # f32 y

    use_resident = resident_vmem(tile_m) <= vmem_budget

    if use_resident:
        grid = (_cdiv(M, tile_m),)
        vmem_limit = int(min(max(int(resident_vmem(tile_m) * 1.2), 32 * _MIB),
                             vmem_ceiling))
        out = pl.pallas_call(
            _mlp_kernel_resident,
            out_shape=jax.ShapeDtypeStruct((M, C), x_dt),
            grid_spec=pltpu.PrefetchScalarGridSpec(
                num_scalar_prefetch=0,
                grid=grid,
                in_specs=[
                    pl.BlockSpec((tile_m, C), lambda i: (i, 0)),  # x tile
                    pl.BlockSpec((C, H), lambda i: (0, 0)),       # W1 resident
                    pl.BlockSpec((1, H), lambda i: (0, 0)),       # b1 resident
                    pl.BlockSpec((H, C), lambda i: (0, 0)),       # W2 resident
                    pl.BlockSpec((1, C), lambda i: (0, 0)),       # b2 resident
                ],
                out_specs=pl.BlockSpec((tile_m, C), lambda i: (i, 0)),
            ),
            compiler_params=pltpu.CompilerParams(
                dimension_semantics=("parallel",),
                vmem_limit_bytes=vmem_limit),
        )(x2, w1, b1, w2, b2)
    else:
        # Fallback: H-tiled reduction (weights too large for resident VMEM,
        # e.g. GPT-2 XL on v7x's 64 MiB per-TC VMEM).
        divisors = [d for d in range(128, min(1024, H) + 1, 128) if H % d == 0]
        if not divisors:
            divisors = [H]

        def tiled_vmem(tm, th):
            return (2 * tm * C * x_b
                    + 2 * tm * C * out_b
                    + 2 * (C * th + th * C) * w_b
                    + 2 * (th + C) * w_b
                    + tm * th * (4 + w_b)
                    + tm * C * 4)

        tile_h = divisors[-1]
        while tile_m > 256 and tiled_vmem(tile_m, tile_h) > vmem_budget:
            tile_m = _round_up(tile_m // 2, 8)
        idx = len(divisors) - 1
        while idx > 0 and tiled_vmem(tile_m, divisors[idx]) > vmem_budget:
            idx -= 1
        tile_h = divisors[idx]

        grid = (_cdiv(M, tile_m), H // tile_h)
        vmem_limit = int(min(max(int(tiled_vmem(tile_m, tile_h) * 1.2),
                                 32 * _MIB),
                             vmem_ceiling))
        out = pl.pallas_call(
            _mlp_kernel_htiled,
            out_shape=jax.ShapeDtypeStruct((M, C), x_dt),
            grid_spec=pltpu.PrefetchScalarGridSpec(
                num_scalar_prefetch=0,
                grid=grid,
                in_specs=[
                    pl.BlockSpec((tile_m, C), lambda i, j: (i, 0)),   # x tile
                    pl.BlockSpec((C, tile_h), lambda i, j: (0, j)),   # W1 slice
                    pl.BlockSpec((1, tile_h), lambda i, j: (0, j)),   # b1 slice
                    pl.BlockSpec((tile_h, C), lambda i, j: (j, 0)),   # W2 slice
                    pl.BlockSpec((1, C), lambda i, j: (0, 0)),        # b2
                ],
                out_specs=pl.BlockSpec((tile_m, C), lambda i, j: (i, 0)),
                scratch_shapes=[pltpu.VMEM((tile_m, C), jnp.float32)],
            ),
            compiler_params=pltpu.CompilerParams(
                dimension_semantics=("parallel", "arbitrary"),
                vmem_limit_bytes=vmem_limit),
        )(x2, w1, b1, w2, b2)

    return out.reshape(B, T, C)


def mlp_reference(x, w_fc, b_fc, w_proj, b_proj):
    h = jnp.einsum("btc,hc->bth", x, w_fc) + b_fc
    h = _gelu_tanh(h)
    return jnp.einsum("bth,ch->btc", h, w_proj) + b_proj


if __name__ == "__main__":
    # Small GPT-2-like config: batch=2, seq=8, n_embd=32 -> hidden 128
    B, T, C = 2, 8, 32
    H = 4 * C

    key = jax.random.PRNGKey(0)
    kx, k1, k2, k3, k4 = jax.random.split(key, 5)

    x = jax.random.normal(kx, (B, T, C), dtype=jnp.float32)
    # nn.Linear parameter shapes: weight (out_features, in_features), bias (out,)
    w_fc = jax.random.normal(k1, (H, C), dtype=jnp.float32) * 0.02
    b_fc = jax.random.normal(k2, (H,), dtype=jnp.float32) * 0.02
    w_proj = jax.random.normal(k3, (C, H), dtype=jnp.float32) * 0.02
    b_proj = jax.random.normal(k4, (C,), dtype=jnp.float32) * 0.02

    # One-time weight prep (transpose to (in, out)). For real configs pass
    # dtype=jnp.bfloat16 (and compare against a bf16 reference / looser tol).
    w1, b1, w2, b2 = prepare_mlp_params(w_fc, b_fc, w_proj, b_proj)

    out = mlp_pallas(x, w1, b1, w2, b2)
    out = jax.block_until_ready(out)

    ref = mlp_reference(x, w_fc, b_fc, w_proj, b_proj)
    assert out.shape == (B, T, C)
    assert jnp.allclose(out, ref, atol=1e-4, rtol=1e-4), (
        float(jnp.max(jnp.abs(out - ref))))

    print("KERNEL_OK")
</pallas_src>

<mosaic_0001>
module attributes {stable_mosaic.version = 11 : i64} {
  func.func @_mlp_kernel_resident(%arg0: i32, %arg1: memref<16x32xf32, #tpu.memory_space<vmem>>, %arg2: memref<32x128xf32, #tpu.memory_space<vmem>>, %arg3: memref<1x128xf32, #tpu.memory_space<vmem>>, %arg4: memref<128x32xf32, #tpu.memory_space<vmem>>, %arg5: memref<1x32xf32, #tpu.memory_space<vmem>>, %arg6: memref<16x32xf32, #tpu.memory_space<vmem>>) attributes {dimension_semantics = [#tpu.dimension_semantics<parallel>], iteration_bounds = array<i64: 1>, scalar_prefetch = 0 : i64, scratch_operands = 0 : i64, tpu.core_type = #tpu.core_type<tc>, window_params = [{transform_indices = @transform_0, window_bounds = array<i64: 16, 32>}, {pipeline_mode = #tpu.pipeline_mode<synchronous>, transform_indices = @transform_1, window_bounds = array<i64: 32, 128>}, {pipeline_mode = #tpu.pipeline_mode<synchronous>, transform_indices = @transform_2, window_bounds = array<i64: 1, 128>}, {pipeline_mode = #tpu.pipeline_mode<synchronous>, transform_indices = @transform_3, window_bounds = array<i64: 128, 32>}, {pipeline_mode = #tpu.pipeline_mode<synchronous>, transform_indices = @transform_4, window_bounds = array<i64: 1, 32>}, {transform_indices = @transform_5, window_bounds = array<i64: 16, 32>}]} {
    %c0 = arith.constant 0 : index
    %c0_0 = arith.constant 0 : index
    %0 = vector.load %arg1[%c0, %c0_0] : memref<16x32xf32, #tpu.memory_space<vmem>>, vector<16x32xf32>
    %c0_1 = arith.constant 0 : index
    %c0_2 = arith.constant 0 : index
    %1 = vector.load %arg2[%c0_1, %c0_2] : memref<32x128xf32, #tpu.memory_space<vmem>>, vector<32x128xf32>
    %cst = arith.constant dense<0.000000e+00> : vector<16x128xf32>
    %2 = tpu.matmul %0, %1, %cst {dimension_numbers = #tpu.dot_dimension_numbers<[1], [0], [0], [1], [0, 0, 1, 1], [], []>} : vector<16x32xf32>, vector<32x128xf32>, vector<16x128xf32> -> vector<16x128xf32>
    %c0_3 = arith.constant 0 : index
    %c0_4 = arith.constant 0 : index
    %3 = vector.load %arg3[%c0_3, %c0_4] : memref<1x128xf32, #tpu.memory_space<vmem>>, vector<1x128xf32>
    %4 = vector.broadcast %3 : vector<1x128xf32> to vector<16x128xf32>
    %5 = arith.addf %2, %4 : vector<16x128xf32>
    %6 = arith.mulf %5, %5 : vector<16x128xf32>
    %cst_5 = arith.constant 0.797884583 : f32
    %7 = vector.broadcast %cst_5 : f32 to vector<16x128xf32>
    %8 = arith.mulf %7, %5 : vector<16x128xf32>
    %cst_6 = arith.constant 4.471500e-02 : f32
    %9 = vector.broadcast %cst_6 : f32 to vector<16x128xf32>
    %10 = arith.mulf %9, %6 : vector<16x128xf32>
    %cst_7 = arith.constant 1.000000e+00 : f32
    %11 = vector.broadcast %cst_7 : f32 to vector<16x128xf32>
    %12 = arith.addf %11, %10 : vector<16x128xf32>
    %13 = arith.mulf %8, %12 : vector<16x128xf32>
    %cst_8 = arith.constant 5.000000e-01 : f32
    %14 = vector.broadcast %cst_8 : f32 to vector<16x128xf32>
    %15 = arith.mulf %14, %5 : vector<16x128xf32>
    %16 = math.tanh %13 : vector<16x128xf32>
    %cst_9 = arith.constant 1.000000e+00 : f32
    %17 = vector.broadcast %cst_9 : f32 to vector<16x128xf32>
    %18 = arith.addf %17, %16 : vector<16x128xf32>
    %19 = arith.mulf %15, %18 : vector<16x128xf32>
    %c0_10 = arith.constant 0 : index
    %c0_11 = arith.constant 0 : index
    %20 = vector.load %arg4[%c0_10, %c0_11] : memref<128x32xf32, #tpu.memory_space<vmem>>, vector<128x32xf32>
    %cst_12 = arith.constant dense<0.000000e+00> : vector<16x32xf32>
    %21 = tpu.matmul %19, %20, %cst_12 {dimension_numbers = #tpu.dot_dimension_numbers<[1], [0], [0], [1], [0, 0, 1, 1], [], []>} : vector<16x128xf32>, vector<128x32xf32>, vector<16x32xf32> -> vector<16x32xf32>
    %c0_13 = arith.constant 0 : index
    %c0_14 = arith.constant 0 : index
    %22 = vector.load %arg5[%c0_13, %c0_14] : memref<1x32xf32, #tpu.memory_space<vmem>>, vector<1x32xf32>
    %23 = vector.broadcast %22 : vector<1x32xf32> to vector<16x32xf32>
    %24 = arith.addf %21, %23 : vector<16x32xf32>
    %c0_15 = arith.constant 0 : index
    %c0_16 = arith.constant 0 : index
    %25 = vector.load %arg6[%c0_15, %c0_16] : memref<16x32xf32, #tpu.memory_space<vmem>>, vector<16x32xf32>
    tpu.vector_store %arg6[%c0_15, %c0_16], %24 {strides = array<i32>} : memref<16x32xf32, #tpu.memory_space<vmem>>, vector<16x32xf32>,
    return
  }
  func.func @transform_0(%arg0: i32) -> (i32, i32) {
    %c0_i32 = arith.constant 0 : i32
    %c0_i32_0 = arith.constant 0 : i32
    return %arg0, %c0_i32 : i32, i32
  }
  func.func @transform_1(%arg0: i32) -> (i32, i32) {
    %c0_i32 = arith.constant 0 : i32
    %c0_i32_0 = arith.constant 0 : i32
    %c0_i32_1 = arith.constant 0 : i32
    return %c0_i32, %c0_i32_0 : i32, i32
  }
  func.func @transform_2(%arg0: i32) -> (i32, i32) {
    %c0_i32 = arith.constant 0 : i32
    %c0_i32_0 = arith.constant 0 : i32
    %c0_i32_1 = arith.constant 0 : i32
    return %c0_i32, %c0_i32_0 : i32, i32
  }
  func.func @transform_3(%arg0: i32) -> (i32, i32) {
    %c0_i32 = arith.constant 0 : i32
    %c0_i32_0 = arith.constant 0 : i32
    %c0_i32_1 = arith.constant 0 : i32
    return %c0_i32, %c0_i32_0 : i32, i32
  }
  func.func @transform_4(%arg0: i32) -> (i32, i32) {
    %c0_i32 = arith.constant 0 : i32
    %c0_i32_0 = arith.constant 0 : i32
    %c0_i32_1 = arith.constant 0 : i32
    return %c0_i32, %c0_i32_0 : i32, i32
  }
  func.func @transform_5(%arg0: i32) -> (i32, i32) {
    %c0_i32 = arith.constant 0 : i32
    %c0_i32_0 = arith.constant 0 : i32
    return %arg0, %c0_i32 : i32, i32
  }
}

</mosaic_0001>

<bundles_post_ra>
// kernel: mlp_pallas.1
= control target key start
LH: loop header
LB: loop body
LE: loop exit
PB: predicated region body
PF: predicated region fallthrough
CT: control target
= control target key end

     0   :  { %vm34_vm0 = vcmask 261120   ;;  %s465_s0 = inlined_call_operand.vmem [shape: f32[16,32], index: 0, kind: input, shape index: {}]   ;;  %s466_s1 = inlined_call_operand.vmem [shape: f32[32,128], index: 1, kind: input, shape index: {}]   ;;  %s467_s2 = inlined_call_operand.vmem [shape: f32[1,128], index: 2, kind: input, shape index: {}]   ;;  %s468_s3 = inlined_call_operand.vmem [shape: f32[128,32], index: 3, kind: input, shape index: {}]   ;;  %s469_s4 = inlined_call_operand.vmem [shape: f32[1,32], index: 4, kind: input, shape index: {}]   ;;  %s470_s5 = inlined_call_operand.hbm [shape: f32[16,32], index: 5, kind: output, shape index: {}]  }
   0x1   :  { %v26_v0 = vld [vmem:[%s466_s1 + $0x18] sm:$0xff]  ;;  %v25_v1 = vld [vmem:[%s466_s1 + $0x10] sm:$0xff]  ;;  %v21_v2 = vld [vmem:[%s465_s0] sm:$0xff] }
   0x2   :  { %278 = vmatprep.subr.mxu0 %v26_v0  ;;  %v24_v3 = vld [vmem:[%s466_s1 + $0x8] sm:$0xff]  ;;  %286 = vmatprep.mubr.msk.f32.mxu0 %vm34_vm0, %v21_v2 }
   0x3   :  { %279 = vmatpush3.msra.mxu0 %v26_v0 }
   0x4   :  { %10 = vsyncpa [#allocation3], 0  ;;  %280 = vmatprep.subr.mxu0 %v25_v1  ;;  %v23_v4 = vld [vmem:[%s466_s1] sm:$0xff]  ;;  %v22_v5 = vld [vmem:[%s465_s0 + $0x8] sm:$0xff]  ;;  %s353_s10 = smov [#allocation2]  }
   0x5   :  { %281 = vmatpush3.msra.mxu0 %v25_v1  ;;  %v149_v6 = vld [vmem:[%s468_s3 + $0x78] sm:$0xff]  ;;  %v148_v7 = vld [vmem:[%s468_s3 + $0x70] sm:$0xff]  ;;  %v147_v8 = vld [vmem:[%s468_s3 + $0x68] sm:$0xff]  ;;  %s239_s11 = sshll.u32 %s353_s10, 4  ;;  %s240_s11 = int_to_ptr.vmem [resolvable:$true] %s239_s11 }
   0x6   :  { %282 = vmatprep.subr.mxu0 %v24_v3  ;;  %289 = vmatprep.subr.mxu1 %v149_v6  ;;  %v146_v9 = vld [vmem:[%s468_s3 + $0x60] sm:$0xff]  ;;  %v145_v10 = vld [vmem:[%s468_s3 + $0x58] sm:$0xff]  ;;  %v144_v11 = vld [vmem:[%s468_s3 + $0x50] sm:$0xff]  ;;  %s331_s12 = scalar_lea.vmem %s240_s11, 256  ;;  %p336_p1 = scmp.lt.s32.totalorder %s240_s11, %s240_s11 }
   0x7   :  { %283 = vmatpush3.msra.mxu0 %v24_v3  ;;  %290 = vmatpush3.msra.mxu1 %v149_v6  ;;  %v143_v12 = vld [vmem:[%s468_s3 + $0x48] sm:$0xff]  ;;  %v142_v13 = vld [vmem:[%s468_s3 + $0x40] sm:$0xff]  ;;  %v141_v14 = vld [vmem:[%s468_s3 + $0x38] sm:$0xff]  ;;  %p332_p0 = scmp.ne.s32.totalorder %s240_s11, %s331_s12  ;;  %p337_p2 = scmp.lt.s32.totalorder %s331_s12, %s331_s12 }
   0x8   :  { %284 = vmatprep.subr.mxu0 %v23_v4  ;;  %291 = vmatprep.subr.mxu1 %v148_v7  ;;  %v140_v15 = vld [vmem:[%s468_s3 + $0x30] sm:$0xff]  ;;  %v139_v16 = vld [vmem:[%s468_s3 + $0x28] sm:$0xff]  ;;  %v138_v17 = vld [vmem:[%s468_s3 + $0x20] sm:$0xff] }
   0x9   :  { %285 = vmatpush3.msra.mxu0 %v23_v4  ;;  %292 = vmatpush3.msra.mxu1 %v148_v7  ;;  %v137_v18 = vld [vmem:[%s468_s3 + $0x18] sm:$0xff]  ;;  %v136_v19 = vld [vmem:[%s468_s3 + $0x10] sm:$0xff]  ;;  %v135_v20 = vld [vmem:[%s468_s3 + $0x8] sm:$0xff]  ;;  %p338_p3 = por %p337_p2, %p336_p1 }
   0xa   :  { %287 = vmatmul.mubr.msk.f32.vlgmr.msra.gmra.mxu0 %vm34_vm0, %v22_v5  ;;  %293 = vmatprep.subr.mxu1 %v147_v8  ;;  %v134_v21 = vld [vmem:[%s468_s3] sm:$0xff] }
   0xb   :  { %294 = vmatpush3.msra.mxu1 %v147_v8  ;;  %v250_v22 = vld [vmem:[%s467_s2] ss:$0 sm:$0xff]  ;;  %p339_p4 = pnand %p338_p3, %p332_p0 }
   0xc   :  { %295 = vmatprep.subr.mxu1 %v146_v9  ;;  %v253_v45 = vld [vmem:[%s469_s4] ss:$0 sm:$0xff] }
   0xd   :  { %296 = vmatpush3.msra.mxu1 %v146_v9 }
   0xe   :  { %297 = vmatprep.subr.mxu1 %v145_v10 }
   0xf   :  { %298 = vmatpush3.msra.mxu1 %v145_v10 }
  0x10   :  { %299 = vmatprep.subr.mxu1 %v144_v11 }
  0x11   :  { %300 = vmatpush3.msra.mxu1 %v144_v11 }
  0x12   :  { %301 = vmatprep.subr.mxu1 %v143_v12 }
  0x13   :  { %302 = vmatpush3.msra.mxu1 %v143_v12 }
  0x14   :  { %303 = vmatprep.subr.mxu1 %v142_v13 }
  0x15   :  { %304 = vmatpush3.msra.mxu1 %v142_v13 }
  0x16   :  { %305 = vmatprep.subr.mxu1 %v141_v14 }
  0x17   :  { %306 = vmatpush3.msra.mxu1 %v141_v14 }
  0x18   :  { %307 = vmatprep.subr.mxu1 %v140_v15 }
  0x19   :  { %308 = vmatpush3.msra.mxu1 %v140_v15 }
  0x1a   :  { %309 = vmatprep.subr.mxu1 %v139_v16 }
  0x1b   :  { %310 = vmatpush3.msra.mxu1 %v139_v16 }
  0x1c   :  { %311 = vmatprep.subr.mxu1 %v138_v17 }
  0x1d   :  { %312 = vmatpush3.msra.mxu1 %v138_v17 }
  0x1e   :  { %313 = vmatprep.subr.mxu1 %v137_v18 }
  0x1f   :  { %314 = vmatpush3.msra.mxu1 %v137_v18 }
  0x20   :  { %315 = vmatprep.subr.mxu1 %v136_v19 }
  0x21   :  { %316 = vmatpush3.msra.mxu1 %v136_v19 }
  0x22   :  { %317 = vmatprep.subr.mxu1 %v135_v20 }
  0x23   :  { %318 = vmatpush3.msra.mxu1 %v135_v20 }
  0x24   :  { %319 = vmatprep.subr.mxu1 %v134_v21 }
  0x25   :  { %320 = vmatpush3.msra.mxu1 %v134_v21 }
  0xca   :  { %v288_v23 = vpop.f32.mrf.mxu0 }
  0xcb   :  { %v113_v24 = vadd.f32 %v288_v23, %v250_v22 }
  0xcc   :  { %v107_v25 = vpop.f32.mrf.mxu0 }
  0xcd   :  { %v117_v26 = vmul.f32 %v113_v24, %v113_v24  ;;  %v108_v27 = vadd.f32 %v250_v22, %v107_v25  ;;  %v119_v30 = vmul.f32 0.7978846, %v113_v24  ;;  %v127_v42 = vmul.f32 0.5, %v113_v24 }
  0xcf   :  { %v121_v28 = vmul.f32 0.044715, %v117_v26  ;;  %v116_v29 = vmul.f32 %v108_v27, %v108_v27  ;;  %v118_v34 = vmul.f32 0.7978846, %v108_v27  ;;  %v126_v40 = vmul.f32 0.5, %v108_v27 }
  0xd1   :  { %v123_v31 = vadd.f32 1.0, %v121_v28  ;;  %v120_v32 = vmul.f32 0.044715, %v116_v29 }
  0xd3   :  { %v125_v33 = vmul.f32 %v123_v31, %v119_v30  ;;  %v122_v35 = vadd.f32 1.0, %v120_v32 }
  0xd5   :  { %327 = vtanh.f32 %v125_v33  ;;  %v124_v36 = vmul.f32 %v122_v35, %v118_v34 }
  0xd7   :  { %329 = vtanh.f32 %v124_v36 }
  0xe2   :  { %v328_v37 = vpop.eup %327 }
  0xe3   :  { %v131_v39 = vadd.f32 1.0, %v328_v37 }
  0xe4   :  { %v330_v38 = vpop.eup %329 }
  0xe5   :  { %v130_v41 = vadd.f32 1.0, %v330_v38  ;;  %v133_v44 = vmul.f32 %v131_v39, %v127_v42 }
  0xe7   :  { %v132_v43 = vmul.f32 %v130_v41, %v126_v40 }
  0xe9   :  { %321 = vmatprep.mubr.f32.mxu1 %v132_v43 }
  0xea   :  { %322 = vmatmul.mubr.f32.vlgmr.msra.gmra.mxu1 %v133_v44 }
 0x1aa   :  { %v323_v46 = vpop.f32.mrf.mxu1 }
 0x1ab   :  { %v229_v47 = vadd.f32 %v323_v46, %v253_v45 }
 0x1ac   :  { %v223_v48 = vpop.f32.mrf.mxu1 }
 0x1ad   :  { %233 = vst.msk [vmem:[#allocation2 + $0x8] sm:$0xff] %vm34_vm0, %v229_v47  ;;  %v224_v49 = vadd.f32 %v253_v45, %v223_v48 }
 0x1af   :  { %232 = vst.msk [vmem:[#allocation2] sm:$0xff] %vm34_vm0, %v224_v49 }
 0x1b0   :  { %342 = shalt.err (!%p339_p4)
}
 0x1b1   :  { %s354_s13 = smov 128   ;;  %s355_s4 = smov 8  }
 0x1b2   :  { %245 = dma.vmem_to_hbm [thread:$0]  %s240_s11, 256, %s470_s5, [#allocation3], %s354_s13, %s354_s13, %s355_s4  }
 0x1b3   :  { %351 = dma.done.wait [#allocation3], 256  }
 0x1b4   :  { %352 = vsyncadd [#allocation3], 4294967040 }
 0x1b5   :  { %249 = vsyncpa [#allocation3], 1 }

</bundles_post_ra>
